<compile_context>
chip_gen: v5e
topology: v5e:2x2
jax: 0.10.0
libtpu: 0.0.40
codegen_flags: <defaults>
</compile_context>

<pallas_src>
import functools

import jax
import jax.numpy as jnp
from jax import lax
from jax.experimental import pallas as pl
from jax.experimental.pallas import tpu as pltpu


def _round_up(x, m):
    return (x + m - 1) // m * m


# --------------------------------------------------------------------------
# Shared helper: conv output tile (c_pad, tile_l) at lane offset `off`.
# One aligned load of the tile + 128-lane halo, then k accumulating MXU dots
# over statically shifted views (contraction dim = cin_pad).
# --------------------------------------------------------------------------
def _conv_tile(xp_ref, w_ref, off, k, tile_l):
    xw = xp_ref[:, pl.ds(off, tile_l + 128)]          # (cin_pad, tile_l + 128)
    y = None
    for t in range(k):                                # k static -> unrolled
        p = jnp.dot(w_ref[t], xw[:, t:t + tile_l],
                    preferred_element_type=jnp.float32)
        y = p if y is None else y + p
    return y                                          # (c_pad, tile_l) f32


def _stats_kernel(xp_ref, w_ref, stat_ref, *, k, tile_l, l_valid):
    """Pass 1: accumulate per-channel sum and sum-of-squares of conv(x)."""
    n = pl.program_id(0)
    lt = pl.program_id(1)

    @pl.when((n == 0) & (lt == 0))
    def _():
        stat_ref[...] = jnp.zeros_like(stat_ref)

    off = pl.multiple_of(lt * tile_l, 128)
    y = _conv_tile(xp_ref, w_ref, off, k, tile_l)

    if l_valid % tile_l:   # static: only mask if a partial last tile exists
        col = lax.broadcasted_iota(jnp.int32, (1, tile_l), 1) + off
        y = jnp.where(col < l_valid, y, 0.0)

    stat_ref[:, 0:1] = stat_ref[:, 0:1] + jnp.sum(y, axis=-1, keepdims=True)
    stat_ref[:, 1:2] = stat_ref[:, 1:2] + jnp.sum(y * y, axis=-1, keepdims=True)


def _norm_kernel(xp_ref, w_ref, ss_ref, o_ref, *, k, tile_l):
    """Pass 2: recompute the cheap conv tile and apply y*scale + shift."""
    lt = pl.program_id(1)
    off = pl.multiple_of(lt * tile_l, 128)
    y = _conv_tile(xp_ref, w_ref, off, k, tile_l)
    scale = ss_ref[:, 0:1]                            # (c_pad, 1) f32
    shift = ss_ref[:, 1:2]
    o_ref[...] = (y * scale + shift).astype(o_ref.dtype)


# --------------------------------------------------------------------------
# Wrapper: layout plumbing + the two pallas_calls.
# --------------------------------------------------------------------------
@functools.partial(jax.jit,
                   static_argnames=("kernel_size", "eps", "use_bf16", "tile_l"))
def sampadding_conv1d_bn_forward(x, weight, bias, gamma, beta, *,
                                 kernel_size, eps=1e-5, use_bf16=True,
                                 tile_l=None):
    """x: (N, C_in, L); weight: (C_out, C_in, k); bias/gamma/beta: (C_out,)."""
    del bias  # exactly cancelled by train-mode BatchNorm (see header comment)
    N, Cin, L = x.shape
    Cout = weight.shape[0]
    k = int(kernel_size)
    assert 1 <= k and k - 1 <= 128, "kernel_size - 1 must fit one lane tile"
    left = (k - 1) // 2          # ConstantPad1d((left, right)), right = k // 2

    if tile_l is None:
        tile_l = min(_round_up(L, 128), 8192)     # lane-dense, VMEM-bounded tile
    num_lt = pl.cdiv(L, tile_l)
    l_out_pad = num_lt * tile_l                   # padded conv-output length
    lp_in = l_out_pad + 128                       # + lane-aligned halo for taps
    cin_pad = _round_up(Cin, 8)
    c_pad = _round_up(Cout, 8)

    mm_dtype = jnp.bfloat16 if use_bf16 else jnp.float32
    itemsize = 2 if use_bf16 else 4

    # "Same" padding + alignment padding, done once (no k-fold im2col copy).
    xp = jnp.pad(x, ((0, 0), (0, cin_pad - Cin),
                     (left, lp_in - L - left))).astype(mm_dtype)   # (N, cin_pad, lp_in)
    # weight (Cout, Cin, k) -> (k, c_pad, cin_pad): one weight slab per tap.
    w = jnp.pad(jnp.transpose(weight, (2, 0, 1)),
                ((0, 0), (0, c_pad - Cout), (0, cin_pad - Cin))).astype(mm_dtype)

    conv_flops = 2 * N * l_out_pad * k * cin_pad * c_pad
    x_bytes = N * cin_pad * lp_in * itemsize
    w_bytes = k * c_pad * cin_pad * itemsize
    out_bytes = N * c_pad * l_out_pad * 4

    grid = (N, num_lt)
    xp_spec = pl.BlockSpec((None, cin_pad, lp_in), lambda n, lt: (n, 0, 0))
    w_spec = pl.BlockSpec((k, c_pad, cin_pad), lambda n, lt: (0, 0, 0))

    # ---------------- pass 1: per-channel sum / sum-of-squares --------------
    stats = pl.pallas_call(
        functools.partial(_stats_kernel, k=k, tile_l=tile_l, l_valid=L),
        out_shape=jax.ShapeDtypeStruct((c_pad, 2), jnp.float32),
        grid=grid,
        in_specs=[xp_spec, w_spec],
        out_specs=pl.BlockSpec((c_pad, 2), lambda n, lt: (0, 0)),
        compiler_params=pltpu.CompilerParams(
            dimension_semantics=("arbitrary", "arbitrary"),
            vmem_limit_bytes=32 * 1024 * 1024),
        cost_estimate=pl.CostEstimate(
            flops=conv_flops + 3 * N * l_out_pad * c_pad,
            transcendentals=0,
            bytes_accessed=x_bytes + w_bytes + c_pad * 2 * 4),
    )(xp, w)

    # Tiny per-channel BN parameters from the batch statistics (all f32).
    inv_nl = 1.0 / float(N * L)
    mean = stats[:, 0] * inv_nl
    var = jnp.maximum(stats[:, 1] * inv_nl - mean * mean, 0.0)   # biased var
    gamma_p = jnp.pad(gamma.astype(jnp.float32), (0, c_pad - Cout))
    beta_p = jnp.pad(beta.astype(jnp.float32), (0, c_pad - Cout))
    scale = gamma_p * lax.rsqrt(var + float(eps))
    shift = beta_p - mean * scale
    sc_sh = jnp.stack([scale, shift], axis=1)                    # (c_pad, 2)

    # ---------------- pass 2: recompute conv tile + normalize ---------------
    out = pl.pallas_call(
        functools.partial(_norm_kernel, k=k, tile_l=tile_l),
        out_shape=jax.ShapeDtypeStruct((N, c_pad, l_out_pad), jnp.float32),
        grid=grid,
        in_specs=[xp_spec, w_spec,
                  pl.BlockSpec((c_pad, 2), lambda n, lt: (0, 0))],
        out_specs=pl.BlockSpec((None, c_pad, tile_l), lambda n, lt: (n, 0, lt)),
        compiler_params=pltpu.CompilerParams(
            dimension_semantics=("parallel", "parallel"),
            vmem_limit_bytes=32 * 1024 * 1024),
        cost_estimate=pl.CostEstimate(
            flops=conv_flops + 2 * N * l_out_pad * c_pad,
            transcendentals=0,
            bytes_accessed=x_bytes + w_bytes + c_pad * 2 * 4 + out_bytes),
    )(xp, w, sc_sh)

    # Output is already (N, C, L)-major: only strip channel / length padding.
    return out[:, :Cout, :L]


# --------------------------------------------------------------------------
# Pure-JAX reference (lax.conv + train-mode BN) for the correctness check.
# --------------------------------------------------------------------------
def reference_forward(x, weight, bias, gamma, beta, kernel_size, eps=1e-5):
    k = kernel_size
    y = lax.conv_general_dilated(
        x, weight, window_strides=(1,),
        padding=[((k - 1) // 2, k // 2)],
        dimension_numbers=("NCH", "OIH", "NCH"),
        precision=lax.Precision.HIGHEST) + bias[None, :, None]
    mean = jnp.mean(y, axis=(0, 2), keepdims=True)
    var = jnp.mean((y - mean) ** 2, axis=(0, 2), keepdims=True)  # biased (train)
    return ((y - mean) * lax.rsqrt(var + eps) * gamma[None, :, None]
            + beta[None, :, None])


# --------------------------------------------------------------------------
if __name__ == "__main__":
    def _run_case(N, Cin, L, Cout, K, *, use_bf16, tile_l, tol):
        kx, kw, kb, kg, kbe = jax.random.split(jax.random.PRNGKey(0), 5)
        x = jax.random.normal(kx, (N, Cin, L), jnp.float32)
        weight = 0.1 * jax.random.normal(kw, (Cout, Cin, K), jnp.float32)
        bias = 0.1 * jax.random.normal(kb, (Cout,), jnp.float32)
        gamma = 1.0 + 0.1 * jax.random.normal(kg, (Cout,), jnp.float32)
        beta = 0.1 * jax.random.normal(kbe, (Cout,), jnp.float32)

        out = sampadding_conv1d_bn_forward(x, weight, bias, gamma, beta,
                                           kernel_size=K, use_bf16=use_bf16,
                                           tile_l=tile_l)
        out = jax.block_until_ready(out)
        assert out.shape == (N, Cout, L), out.shape
        ref = reference_forward(x, weight, bias, gamma, beta, K)
        err = float(jnp.max(jnp.abs(out - ref)))
        assert err <= tol, (N, Cin, L, Cout, K, use_bf16, err)

    # f32 operands, single L tile, partial-tile stats masking (L=16 < 128).
    _run_case(2, 4, 16, 6, 3, use_bf16=False, tile_l=None, tol=2e-3)
    # f32 operands, multiple L tiles, odd channel counts, k=5 taps.
    _run_case(2, 3, 300, 5, 5, use_bf16=False, tile_l=128, tol=2e-3)
    # bf16 matmul operands (default fast path), f32 BN math, looser tolerance.
    _run_case(2, 4, 16, 6, 3, use_bf16=True, tile_l=None, tol=1.5e-1)

    print("KERNEL_OK")
</pallas_src>

<mosaic_0001>
module attributes {stable_mosaic.version = 11 : i64} {
  func.func @_stats_kernel(%arg0: i32, %arg1: i32, %arg2: memref<1x8x256xf32, #tpu.memory_space<vmem>>, %arg3: memref<3x8x8xf32, #tpu.memory_space<vmem>>, %arg4: memref<8x2xf32, #tpu.memory_space<vmem>>) attributes {dimension_semantics = [#tpu.dimension_semantics<arbitrary>, #tpu.dimension_semantics<arbitrary>], iteration_bounds = array<i64: 2, 1>, scalar_prefetch = 0 : i64, scratch_operands = 0 : i64, tpu.core_type = #tpu.core_type<tc>, window_params = [{transform_indices = @transform_0, window_bounds = array<i64: 1, 8, 256>}, {pipeline_mode = #tpu.pipeline_mode<synchronous>, transform_indices = @transform_1, window_bounds = array<i64: 3, 8, 8>}, {pipeline_mode = #tpu.pipeline_mode<synchronous>, transform_indices = @transform_2, window_bounds = array<i64: 8, 2>}]} {
    %c0_i32 = arith.constant 0 : i32
    %0 = arith.cmpi eq, %arg0, %c0_i32 : i32
    %c0_i32_0 = arith.constant 0 : i32
    %1 = arith.cmpi eq, %arg1, %c0_i32_0 : i32
    %2 = arith.andi %0, %1 : i1
    %3 = arith.extui %2 : i1 to i32
    %c0_i32_1 = arith.constant 0 : i32
    %4 = arith.cmpi ne, %3, %c0_i32_1 : i32
    scf.if %4 {
      %cst_23 = arith.constant 0.000000e+00 : f32
      %44 = vector.broadcast %cst_23 : f32 to vector<8x2xf32>
      %c0_24 = arith.constant 0 : index
      %c0_25 = arith.constant 0 : index
      %45 = vector.load %arg4[%c0_24, %c0_25] : memref<8x2xf32, #tpu.memory_space<vmem>>, vector<8x2xf32>
      tpu.vector_store %arg4[%c0_24, %c0_25], %44 {strides = array<i32>} : memref<8x2xf32, #tpu.memory_space<vmem>>, vector<8x2xf32>,
    } else {
    }
    %c128_i32 = arith.constant 128 : i32
    %5 = arith.muli %arg1, %c128_i32 : i32
    %6 = tpu.assume_multiple %5, 128 : i32
    %c0 = arith.constant 0 : index
    %c0_2 = arith.constant 0 : index
    %7 = arith.index_cast %6 : i32 to index
    %8 = vector.load %arg2[%c0, %c0_2, %7] : memref<1x8x256xf32, #tpu.memory_space<vmem>>, vector<1x8x256xf32>
    %9 = vector.shape_cast %8 : vector<1x8x256xf32> to vector<8x256xf32>
    %c0_3 = arith.constant 0 : index
    %c0_4 = arith.constant 0 : index
    %c0_5 = arith.constant 0 : index
    %10 = vector.load %arg3[%c0_3, %c0_4, %c0_5] : memref<3x8x8xf32, #tpu.memory_space<vmem>>, vector<1x8x8xf32>
    %11 = vector.shape_cast %10 : vector<1x8x8xf32> to vector<8x8xf32>
    %12 = vector.extract_strided_slice %9 {offsets = [0, 0], sizes = [8, 128], strides = [1, 1]} : vector<8x256xf32> to vector<8x128xf32>
    %cst = arith.constant dense<0.000000e+00> : vector<8x128xf32>
    %13 = tpu.matmul %11, %12, %cst {dimension_numbers = #tpu.dot_dimension_numbers<[1], [0], [0], [1], [0, 0, 1, 1], [], []>} : vector<8x8xf32>, vector<8x128xf32>, vector<8x128xf32> -> vector<8x128xf32>
    %c1 = arith.constant 1 : index
    %c0_6 = arith.constant 0 : index
    %c0_7 = arith.constant 0 : index
    %14 = vector.load %arg3[%c1, %c0_6, %c0_7] : memref<3x8x8xf32, #tpu.memory_space<vmem>>, vector<1x8x8xf32>
    %15 = vector.shape_cast %14 : vector<1x8x8xf32> to vector<8x8xf32>
    %16 = vector.extract_strided_slice %9 {offsets = [0, 1], sizes = [8, 128], strides = [1, 1]} : vector<8x256xf32> to vector<8x128xf32>
    %cst_8 = arith.constant dense<0.000000e+00> : vector<8x128xf32>
    %17 = tpu.matmul %15, %16, %cst_8 {dimension_numbers = #tpu.dot_dimension_numbers<[1], [0], [0], [1], [0, 0, 1, 1], [], []>} : vector<8x8xf32>, vector<8x128xf32>, vector<8x128xf32> -> vector<8x128xf32>
    %18 = arith.addf %13, %17 : vector<8x128xf32>
    %c2 = arith.constant 2 : index
    %c0_9 = arith.constant 0 : index
    %c0_10 = arith.constant 0 : index
    %19 = vector.load %arg3[%c2, %c0_9, %c0_10] : memref<3x8x8xf32, #tpu.memory_space<vmem>>, vector<1x8x8xf32>
    %20 = vector.shape_cast %19 : vector<1x8x8xf32> to vector<8x8xf32>
    %21 = vector.extract_strided_slice %9 {offsets = [0, 2], sizes = [8, 128], strides = [1, 1]} : vector<8x256xf32> to vector<8x128xf32>
    %cst_11 = arith.constant dense<0.000000e+00> : vector<8x128xf32>
    %22 = tpu.matmul %20, %21, %cst_11 {dimension_numbers = #tpu.dot_dimension_numbers<[1], [0], [0], [1], [0, 0, 1, 1], [], []>} : vector<8x8xf32>, vector<8x128xf32>, vector<8x128xf32> -> vector<8x128xf32>
    %23 = arith.addf %18, %22 : vector<8x128xf32>
    %24 = tpu.iota {dimensions = array<i32: 1>} : vector<1x128xi32>
    %25 = vector.broadcast %6 : i32 to vector<1x128xi32>
    %26 = arith.addi %24, %25 : vector<1x128xi32>
    %c16_i32 = arith.constant 16 : i32
    %27 = vector.broadcast %c16_i32 : i32 to vector<1x128xi32>
    %28 = arith.cmpi slt, %26, %27 : vector<1x128xi32>
    %cst_12 = arith.constant 0.000000e+00 : f32
    %29 = vector.shape_cast %28 : vector<1x128xi1> to vector<1x128xi1>
    %30 = vector.broadcast %29 : vector<1x128xi1> to vector<8x128xi1>
    %31 = vector.broadcast %cst_12 : f32 to vector<8x128xf32>
    %32 = arith.select %30, %23, %31 : vector<8x128xi1>, vector<8x128xf32>
    %c0_13 = arith.constant 0 : index
    %c0_14 = arith.constant 0 : index
    %33 = vector.load %arg4[%c0_13, %c0_14] : memref<8x2xf32, #tpu.memory_space<vmem>>, vector<8x1xf32>
    %cst_15 = arith.constant dense<0.000000e+00> : vector<8xf32>
    %34 = vector.multi_reduction <add>, %32, %cst_15 [1] : vector<8x128xf32> to vector<8xf32>
    %35 = vector.shape_cast %34 : vector<8xf32> to vector<8x1xf32>
    %36 = arith.addf %33, %35 : vector<8x1xf32>
    %c0_16 = arith.constant 0 : index
    %c0_17 = arith.constant 0 : index
    %37 = vector.load %arg4[%c0_16, %c0_17] : memref<8x2xf32, #tpu.memory_space<vmem>>, vector<8x1xf32>
    tpu.vector_store %arg4[%c0_16, %c0_17], %36 {strides = array<i32>} : memref<8x2xf32, #tpu.memory_space<vmem>>, vector<8x1xf32>,
    %c0_18 = arith.constant 0 : index
    %c1_19 = arith.constant 1 : index
    %38 = vector.load %arg4[%c0_18, %c1_19] : memref<8x2xf32, #tpu.memory_space<vmem>>, vector<8x1xf32>
    %39 = arith.mulf %32, %32 : vector<8x128xf32>
    %cst_20 = arith.constant dense<0.000000e+00> : vector<8xf32>
    %40 = vector.multi_reduction <add>, %39, %cst_20 [1] : vector<8x128xf32> to vector<8xf32>
    %41 = vector.shape_cast %40 : vector<8xf32> to vector<8x1xf32>
    %42 = arith.addf %38, %41 : vector<8x1xf32>
    %c0_21 = arith.constant 0 : index
    %c1_22 = arith.constant 1 : index
    %43 = vector.load %arg4[%c0_21, %c1_22] : memref<8x2xf32, #tpu.memory_space<vmem>>, vector<8x1xf32>
    tpu.vector_store %arg4[%c0_21, %c1_22], %42 {strides = array<i32>} : memref<8x2xf32, #tpu.memory_space<vmem>>, vector<8x1xf32>,
    return
  }
  func.func @transform_0(%arg0: i32, %arg1: i32) -> (i32, i32, i32) {
    %c0_i32 = arith.constant 0 : i32
    %c0_i32_0 = arith.constant 0 : i32
    %c0_i32_1 = arith.constant 0 : i32
    return %arg0, %c0_i32, %c0_i32_0 : i32, i32, i32
  }
  func.func @transform_1(%arg0: i32, %arg1: i32) -> (i32, i32, i32) {
    %c0_i32 = arith.constant 0 : i32
    %c0_i32_0 = arith.constant 0 : i32
    %c0_i32_1 = arith.constant 0 : i32
    %c0_i32_2 = arith.constant 0 : i32
    return %c0_i32, %c0_i32_0, %c0_i32_1 : i32, i32, i32
  }
  func.func @transform_2(%arg0: i32, %arg1: i32) -> (i32, i32) {
    %c0_i32 = arith.constant 0 : i32
    %c0_i32_0 = arith.constant 0 : i32
    %c0_i32_1 = arith.constant 0 : i32
    return %c0_i32, %c0_i32_0 : i32, i32
  }
}

module attributes {stable_mosaic.version = 11 : i64} {
  func.func @_norm_kernel(%arg0: i32, %arg1: i32, %arg2: memref<1x8x256xf32, #tpu.memory_space<vmem>>, %arg3: memref<3x8x8xf32, #tpu.memory_space<vmem>>, %arg4: memref<8x2xf32, #tpu.memory_space<vmem>>, %arg5: memref<1x8x128xf32, #tpu.memory_space<vmem>>) attributes {dimension_semantics = [#tpu.dimension_semantics<parallel>, #tpu.dimension_semantics<parallel>], iteration_bounds = array<i64: 2, 1>, scalar_prefetch = 0 : i64, scratch_operands = 0 : i64, tpu.core_type = #tpu.core_type<tc>, window_params = [{transform_indices = @transform_0, window_bounds = array<i64: 1, 8, 256>}, {pipeline_mode = #tpu.pipeline_mode<synchronous>, transform_indices = @transform_1, window_bounds = array<i64: 3, 8, 8>}, {pipeline_mode = #tpu.pipeline_mode<synchronous>, transform_indices = @transform_2, window_bounds = array<i64: 8, 2>}, {transform_indices = @transform_3, window_bounds = array<i64: 1, 8, 128>}]} {
    %c128_i32 = arith.constant 128 : i32
    %0 = arith.muli %arg1, %c128_i32 : i32
    %1 = tpu.assume_multiple %0, 128 : i32
    %c0 = arith.constant 0 : index
    %c0_0 = arith.constant 0 : index
    %2 = arith.index_cast %1 : i32 to index
    %3 = vector.load %arg2[%c0, %c0_0, %2] : memref<1x8x256xf32, #tpu.memory_space<vmem>>, vector<1x8x256xf32>
    %4 = vector.shape_cast %3 : vector<1x8x256xf32> to vector<8x256xf32>
    %c0_1 = arith.constant 0 : index
    %c0_2 = arith.constant 0 : index
    %c0_3 = arith.constant 0 : index
    %5 = vector.load %arg3[%c0_1, %c0_2, %c0_3] : memref<3x8x8xf32, #tpu.memory_space<vmem>>, vector<1x8x8xf32>
    %6 = vector.shape_cast %5 : vector<1x8x8xf32> to vector<8x8xf32>
    %7 = vector.extract_strided_slice %4 {offsets = [0, 0], sizes = [8, 128], strides = [1, 1]} : vector<8x256xf32> to vector<8x128xf32>
    %cst = arith.constant dense<0.000000e+00> : vector<8x128xf32>
    %8 = tpu.matmul %6, %7, %cst {dimension_numbers = #tpu.dot_dimension_numbers<[1], [0], [0], [1], [0, 0, 1, 1], [], []>} : vector<8x8xf32>, vector<8x128xf32>, vector<8x128xf32> -> vector<8x128xf32>
    %c1 = arith.constant 1 : index
    %c0_4 = arith.constant 0 : index
    %c0_5 = arith.constant 0 : index
    %9 = vector.load %arg3[%c1, %c0_4, %c0_5] : memref<3x8x8xf32, #tpu.memory_space<vmem>>, vector<1x8x8xf32>
    %10 = vector.shape_cast %9 : vector<1x8x8xf32> to vector<8x8xf32>
    %11 = vector.extract_strided_slice %4 {offsets = [0, 1], sizes = [8, 128], strides = [1, 1]} : vector<8x256xf32> to vector<8x128xf32>
    %cst_6 = arith.constant dense<0.000000e+00> : vector<8x128xf32>
    %12 = tpu.matmul %10, %11, %cst_6 {dimension_numbers = #tpu.dot_dimension_numbers<[1], [0], [0], [1], [0, 0, 1, 1], [], []>} : vector<8x8xf32>, vector<8x128xf32>, vector<8x128xf32> -> vector<8x128xf32>
    %13 = arith.addf %8, %12 : vector<8x128xf32>
    %c2 = arith.constant 2 : index
    %c0_7 = arith.constant 0 : index
    %c0_8 = arith.constant 0 : index
    %14 = vector.load %arg3[%c2, %c0_7, %c0_8] : memref<3x8x8xf32, #tpu.memory_space<vmem>>, vector<1x8x8xf32>
    %15 = vector.shape_cast %14 : vector<1x8x8xf32> to vector<8x8xf32>
    %16 = vector.extract_strided_slice %4 {offsets = [0, 2], sizes = [8, 128], strides = [1, 1]} : vector<8x256xf32> to vector<8x128xf32>
    %cst_9 = arith.constant dense<0.000000e+00> : vector<8x128xf32>
    %17 = tpu.matmul %15, %16, %cst_9 {dimension_numbers = #tpu.dot_dimension_numbers<[1], [0], [0], [1], [0, 0, 1, 1], [], []>} : vector<8x8xf32>, vector<8x128xf32>, vector<8x128xf32> -> vector<8x128xf32>
    %18 = arith.addf %13, %17 : vector<8x128xf32>
    %c0_10 = arith.constant 0 : index
    %c0_11 = arith.constant 0 : index
    %19 = vector.load %arg4[%c0_10, %c0_11] : memref<8x2xf32, #tpu.memory_space<vmem>>, vector<8x1xf32>
    %c0_12 = arith.constant 0 : index
    %c1_13 = arith.constant 1 : index
    %20 = vector.load %arg4[%c0_12, %c1_13] : memref<8x2xf32, #tpu.memory_space<vmem>>, vector<8x1xf32>
    %21 = vector.broadcast %19 : vector<8x1xf32> to vector<8x128xf32>
    %22 = arith.mulf %18, %21 : vector<8x128xf32>
    %23 = vector.broadcast %20 : vector<8x1xf32> to vector<8x128xf32>
    %24 = arith.addf %22, %23 : vector<8x128xf32>
    %c0_14 = arith.constant 0 : index
    %c0_15 = arith.constant 0 : index
    %c0_16 = arith.constant 0 : index
    %25 = vector.load %arg5[%c0_14, %c0_15, %c0_16] : memref<1x8x128xf32, #tpu.memory_space<vmem>>, vector<1x8x128xf32>
    %26 = vector.shape_cast %25 : vector<1x8x128xf32> to vector<8x128xf32>
    %27 = vector.shape_cast %24 : vector<8x128xf32> to vector<1x8x128xf32>
    tpu.vector_store %arg5[%c0_14, %c0_15, %c0_16], %27 {strides = array<i32>} : memref<1x8x128xf32, #tpu.memory_space<vmem>>, vector<1x8x128xf32>,
    return
  }
  func.func @transform_0(%arg0: i32, %arg1: i32) -> (i32, i32, i32) {
    %c0_i32 = arith.constant 0 : i32
    %c0_i32_0 = arith.constant 0 : i32
    %c0_i32_1 = arith.constant 0 : i32
    return %arg0, %c0_i32, %c0_i32_0 : i32, i32, i32
  }
  func.func @transform_1(%arg0: i32, %arg1: i32) -> (i32, i32, i32) {
    %c0_i32 = arith.constant 0 : i32
    %c0_i32_0 = arith.constant 0 : i32
    %c0_i32_1 = arith.constant 0 : i32
    %c0_i32_2 = arith.constant 0 : i32
    return %c0_i32, %c0_i32_0, %c0_i32_1 : i32, i32, i32
  }
  func.func @transform_2(%arg0: i32, %arg1: i32) -> (i32, i32) {
    %c0_i32 = arith.constant 0 : i32
    %c0_i32_0 = arith.constant 0 : i32
    %c0_i32_1 = arith.constant 0 : i32
    return %c0_i32, %c0_i32_0 : i32, i32
  }
  func.func @transform_3(%arg0: i32, %arg1: i32) -> (i32, i32, i32) {
    %c0_i32 = arith.constant 0 : i32
    %c0_i32_0 = arith.constant 0 : i32
    return %arg0, %c0_i32, %arg1 : i32, i32, i32
  }
}

</mosaic_0001>

<bundles_post_ra>
// kernel: sampadding_conv1d_bn_forward.2
= control target key start
LH: loop header
LB: loop body
LE: loop exit
PB: predicated region body
PF: predicated region fallthrough
CT: control target
= control target key end

     0   :  { %s402_s9 = smov 0   ;;  %s404_s10 = smov 0   ;;  %s459_s0 = inlined_call_operand.vmem [shape: f32[2,8,256], index: 0, kind: input, shape index: {}]   ;;  %s460_s1 = inlined_call_operand.vmem [shape: f32[3,8,8], index: 1, kind: input, shape index: {}]   ;;  %s461_s2 = inlined_call_operand.vmem [shape: f32[8,2], index: 2, kind: output, shape index: {}]  }
   0x1   :  { %s406_s11 = smov 0  }
   0x2 LB: > { %s24_s12 = sadd.s32 1, %s378_s10  ;;  %p310_p0 = scmp.ge.s32.totalorder %s382_s11, 1  ;;  %s382_s11 = sphi %s406_s11, %s12_s11   ;;  %s378_s10 = sphi %s404_s10, %s463_s10   ;;  %s374_s9 = sphi %s402_s9, %s462_s9  }
   0x3   : > { %p26_p1 = scmp.ge.s32.totalorder %s24_s12, 2  ;;  %p119_p2 = scmp.lt.s32.totalorder %s382_s11, 3 }
   0x5   : > { %s465_s12 = smov (%p26_p1, %s24_s12), 0  ;;  %p120_p3 = pnand %p310_p0, %p119_p2 }
   0x6   : > { %p136_p4 = scmp.lt.s32.totalorder (!%p120_p3), %s374_s9, 1  ;;  %p141_p5 = scmp.eq.s32.totalorder (!%p120_p3), %s374_s9, 0 }
   0x7   : > { %123 = sbr.rel (%p120_p3) target bundleno = 407 (0x197), region = 28 }
   0xc   : > { %s467_s9 = smov (!%p136_p4, %s374_s9), 1  ;;  %146 = sbr.rel (!%p141_p5) target bundleno = 17 (0x11), region = 32  ;;  %vm147_vm0 = vcmask (%p141_p5), 15360   ;;  %v384_v0 = vmov (%p141_p5), 0.0  }
   0xd   : > { %s321_s13 = sshll.u32 %s467_s9, 4  ;;  %148 = vst.msk [vmem:[%s461_s2] sm:$0xff] (%p141_p5), %vm147_vm0, %v384_v0 }
   0xe   : > { %s140_s16 = scalar_lea.vmem %s459_s0, %s321_s13 }
  0x11 PF: > { %v154_v1 = vld [vmem:[%s140_s16] sm:$0xff]  ;;  %v155_v2 = vld [vmem:[%s140_s16 + $0x8] sm:$0xff]  ;;  %s385_s19 = smov 126   ;;  %s386_s20 = smov 127   ;;  %vm168_vm1 = vcmask 64512   ;;  %vm221_vm2 = vcmask 1031168   ;;  %v248_v15 = vlaneseq }
  0x12   : > { %v350_v3 = vpack.i.bf16 %v155_v2, %v154_v1  ;;  %210 = vmatpush.msra.mxu1 %v154_v1  ;;  %v156_v4 = vld [vmem:[%s460_s1] sm:$0xff]  ;;  %v317_v8 = vld [vmem:[%s460_s1 + $0x10] sm:$0xff]  ;;  %vm165_vm3 = vcmask 1039360   ;;  %v314_v13 = vld [vmem:[%s460_s1 + $0x8] sm:$0xff]  ;;  %vm260_vm5 = vcmask 7168   ;;  %vm267_vm6 = vcmask 15368  }
  0x13   : > { %316 = vmatmul.msk.f32.vlgmr.msra.gmra.mxu1 %vm168_vm1, %v156_v4  ;;  %v249_v17 = vand.u32 127, %v248_v15 }
  0x14   : > { %351 = vrot.lane.b32.xlu0 %v350_v3, %s385_s19  ;;  %v256_v24 = vld [vmem:[%s461_s2] sm:$0xff] }
  0x15   : > { %vm252_vm4 = vcmp.lt.s32.totalorder %v249_v17, 16 }
  0x1c   : > { %356 = vrot.lane.b32.xlu0 %v350_v3, %s386_s20 }
  0x86   : > { %v352_v5 = vpop.permute.xlu0 %351 }
  0x87   : > { %v354_v6 = vunpack.i.h.bf16 %v352_v5  ;;  %v353_v7 = vunpack.i.l.bf16 %v352_v5 }
  0x89   : > { %v222_v9 = vsel %vm221_vm2, %v353_v7, %v354_v6 }
  0x8a   : > { %242 = vmatpush.msra.mxu2 %v222_v9 }
  0x8b   : > { %318 = vmatmul.msk.f32.vlgmr.msra.gmra.mxu2 %vm168_vm1, %v317_v8 }
  0x8e   : > { %v357_v10 = vpop.permute.xlu0 %356 }
  0x8f   : > { %v359_v11 = vunpack.i.h.bf16 %v357_v10  ;;  %v358_v12 = vunpack.i.l.bf16 %v357_v10 }
  0x90   : > { %v212_v16 = vpop.f32.mrf.mxu1 }
  0x91   : > { %v166_v14 = vsel %vm165_vm3, %v358_v12, %v359_v11 }
  0x92   : > { %187 = vmatpush.msra.mxu0 %v166_v14 }
  0x93   : > { %315 = vmatmul.msk.f32.vlgmr.msra.gmra.mxu0 %vm168_vm1, %v314_v13 }
 0x10e   : > { %v244_v19 = vpop.f32.mrf.mxu2 }
 0x110   : > { %v189_v18 = vpop.f32.mrf.mxu0 }
 0x111   : > { %v213_v20 = vadd.f32 %v212_v16, %v189_v18 }
 0x113   : > { %v247_v21 = vadd.f32 %v244_v19, %v213_v20 }
 0x115   : > { %v255_v22 = vsel %vm252_vm4, %v247_v21, 0.0 }
 0x116   : > { %257 = vadd.xlane.f32.xlu1 %v255_v22  ;;  %v263_v23 = vmul.f32 %v255_v22, %v255_v22 }
 0x11e   : > { %264 = vadd.xlane.f32.xlu1 %v263_v23 }
 0x189   : > { %v258_v25 = vpop.xlane.xlu1 %257 }
 0x18a   : > { %v259_v26 = vadd.f32 %v258_v25, %v256_v24 }
 0x18c   : > { %261 = vst.msk [vmem:[%s461_s2] sm:$0xff] %vm260_vm5, %v259_v26 }
 0x191   : > { %v265_v28 = vpop.xlane.xlu1 %264 }
 0x193   : > { %v262_v27 = vld [vmem:[%s461_s2] sm:$0xff] }
 0x194   : > { %v266_v29 = vadd.f32 %v265_v28, %v262_v27 }
 0x196   : > { %268 = vst.msk [vmem:[%s461_s2] sm:$0xff] %vm267_vm6, %v266_v29 }
 0x197 PF: > { %s12_s11 = sadd.s32 1, %s382_s11   ;;  %s462_s9 = smov %s378_s10 }
 0x198   : > { %p9_p6 = scmp.ge.s32.totalorder %s12_s11, 4   ;;  %s463_s10 = smov %s465_s12 }
 0x19a   :  { %11 = sbr.rel (!%p9_p6) target bundleno = 2 (0x2), region = 61 }

// kernel: sampadding_conv1d_bn_forward.3
= control target key start
LH: loop header
LB: loop body
LE: loop exit
PB: predicated region body
PF: predicated region fallthrough
CT: control target
= control target key end

     0   :  { %s479_s12 = smov 0   ;;  %s481_s13 = smov 0   ;;  %s531_s0 = inlined_call_operand.vmem [shape: f32[2,8,256], index: 0, kind: input, shape index: {}]   ;;  %s532_s1 = inlined_call_operand.vmem [shape: f32[3,8,8], index: 1, kind: input, shape index: {}]   ;;  %s533_s2 = inlined_call_operand.vmem [shape: f32[8,2], index: 2, kind: input, shape index: {}]   ;;  %s534_s3 = inlined_call_operand.vmem [shape: f32[2,8,128], index: 3, kind: output, shape index: {}]  }
   0x1   :  { %s483_s14 = smov 0  }
   0x2 LB: > { %s25_s15 = sadd.s32 1, %s449_s13  ;;  %p378_p0 = scmp.ge.s32.totalorder %s453_s14, 1  ;;  %s453_s14 = sphi %s483_s14, %s13_s14   ;;  %s449_s13 = sphi %s481_s13, %s536_s13   ;;  %s445_s12 = sphi %s479_s12, %s535_s12  }
   0x3   : > { %p27_p1 = scmp.ge.s32.totalorder %s25_s15, 2  ;;  %p151_p2 = scmp.lt.s32.totalorder %s453_s14, 3 }
   0x5   : > { %s538_s15 = smov (%p27_p1, %s25_s15), 0  ;;  %p152_p3 = pnand %p378_p0, %p151_p2 }
   0x6   : > { %p177_p4 = scmp.lt.s32.totalorder (!%p152_p3), %s445_s12, 1  ;;  %s455_s20 = smov (!%p152_p3), 126  }
   0x7   : > { %155 = sbr.rel (%p152_p3) target bundleno = 280 (0x118), region = 32  ;;  %s456_s21 = smov (!%p152_p3), 127  }
   0xc   : > { %s540_s12 = smov (!%p177_p4, %s445_s12), 1  ;;  %vm208_vm0 = vcmask 64512   ;;  %v196_v3 = vld [vmem:[%s532_s1] sm:$0xff]  ;;  %v457_v5 = vmov 0   ;;  %v458_v6 = vmov 1   ;;  %vm261_vm1 = vcmask 1031168  }
   0xd   : > { %s389_s16 = sshll.u32 %s540_s12, 4  ;;  %v288_v4 = vld [vmem:[%s533_s2] sm:$0xff]  ;;  %428 = vset.pattern.permute.xlu1 %v457_v5  ;;  %430 = vset.pattern.permute.xlu0 %v458_v6  ;;  %v385_v10 = vld [vmem:[%s532_s1 + $0x10] sm:$0xff]  ;;  %vm205_vm2 = vcmask 1039360   ;;  %v382_v15 = vld [vmem:[%s532_s1 + $0x8] sm:$0xff]  ;;  %s381_s30 = sshll.u32 %s540_s12, 3 }
   0xe   : > { %s181_s19 = scalar_lea.vmem %s531_s0, %s389_s16  ;;  %291 = vperm.xlu1 %428, %v288_v4   ;;  %s188_s6 = scalar_lea.vmem %s534_s3, %s381_s30 }
   0xf   : > { %v194_v0 = vld [vmem:[%s181_s19] sm:$0xff]  ;;  %v195_v1 = vld [vmem:[%s181_s19 + $0x8] sm:$0xff] }
  0x10   : > { %v418_v2 = vpack.i.bf16 %v195_v1, %v194_v0  ;;  %250 = vmatpush.msra.mxu1 %v194_v0 }
  0x11   : > { %384 = vmatmul.msk.f32.vlgmr.msra.gmra.mxu1 %vm208_vm0, %v196_v3 }
  0x12   : > { %419 = vrot.lane.b32.xlu0 %v418_v2, %s455_s20 }
  0x16   : > { %429 = vset.pattern.permute.xlu1 %v458_v6 }
  0x17   : > { %296 = vperm.xlu1 %429, %v288_v4  }
  0x1a   : > { %424 = vrot.lane.b32.xlu0 %v418_v2, %s456_s21 }
  0x80   : > { %v292_v17 = vpop.permute.xlu1 %291 }
  0x84   : > { %v420_v7 = vpop.permute.xlu0 %419 }
  0x85   : > { %v422_v8 = vunpack.i.h.bf16 %v420_v7  ;;  %v421_v9 = vunpack.i.l.bf16 %v420_v7 }
  0x87   : > { %v262_v11 = vsel %vm261_vm1, %v421_v9, %v422_v8 }
  0x88   : > { %282 = vmatpush.msra.mxu2 %v262_v11 }
  0x89   : > { %386 = vmatmul.msk.f32.vlgmr.msra.gmra.mxu2 %vm208_vm0, %v385_v10  ;;  %v297_v23 = vpop.permute.xlu1 %296 }
  0x8c   : > { %v425_v12 = vpop.permute.xlu0 %424 }
  0x8d   : > { %v427_v13 = vunpack.i.h.bf16 %v425_v12  ;;  %v426_v14 = vunpack.i.l.bf16 %v425_v12 }
  0x8e   : > { %v252_v18 = vpop.f32.mrf.mxu1 }
  0x8f   : > { %v206_v16 = vsel %vm205_vm2, %v426_v14, %v427_v13 }
  0x90   : > { %227 = vmatpush.msra.mxu0 %v206_v16 }
  0x91   : > { %383 = vmatmul.msk.f32.vlgmr.msra.gmra.mxu0 %vm208_vm0, %v382_v15 }
 0x10c   : > { %v284_v20 = vpop.f32.mrf.mxu2 }
 0x10e   : > { %v229_v19 = vpop.f32.mrf.mxu0 }
 0x10f   : > { %v253_v21 = vadd.f32 %v252_v18, %v229_v19 }
 0x111   : > { %v287_v22 = vadd.f32 %v284_v20, %v253_v21 }
 0x113   : > { %v294_v24 = vmul.f32 %v292_v17, %v287_v22 }
 0x115   : > { %v299_v25 = vadd.f32 %v297_v23, %v294_v24 }
 0x117   : > { %300 = vst [vmem:[%s188_s6] sm:$0xff] %v299_v25 }
 0x118 PF: > { %s13_s14 = sadd.s32 1, %s453_s14   ;;  %s535_s12 = smov %s449_s13 }
 0x119   : > { %p10_p5 = scmp.ge.s32.totalorder %s13_s14, 4   ;;  %s536_s13 = smov %s538_s15 }
 0x11b   :  { %12 = sbr.rel (!%p10_p5) target bundleno = 2 (0x2), region = 65 }

</bundles_post_ra>
